<compile_context>
chip_gen: v7x
topology: tpu7x:2x2x1
jax: 0.10.0
libtpu: 0.0.40
codegen_flags: <defaults>
</compile_context>

<pallas_src>
import functools

import jax
import jax.numpy as jnp
from jax.experimental import pallas as pl
from jax.experimental.pallas import tpu as pltpu


# ----------------------------- Pallas kernel -------------------------------- #

def _psm_cosine_kernel(l_ref, r_ref, o_ref, *, depth_channel, num_channels):
    """Compute all D disparity correlation slices for one (batch, H-tile) block.

    l_ref/r_ref blocks: (1, C, TH, W);  o_ref block: (1, D, TH, W).
    """
    l = l_ref[0]                       # (C, TH, W) f32, VMEM-resident
    r = r_ref[0]                       # (C, TH, W)
    _, th, w = l.shape
    lane_axis = r.ndim - 1             # positive axis index (pltpu.roll rejects -1)

    inv_c = jnp.float32(1.0 / num_channels)
    # lane index, hoisted once (used to zero the wrapped columns w < d)
    w_idx = jax.lax.broadcasted_iota(jnp.int32, (th, w), 1)

    for d in range(depth_channel):     # static unroll; D is small
        if d == 0:
            r_shift = r
        else:
            # r_shift[c, h, w] = r[c, h, (w - d) mod W]  -- XLU lane rotation
            r_shift = pltpu.roll(r, shift=d, axis=lane_axis)
        s = jnp.sum(l * r_shift, axis=0) * inv_c          # (TH, W) f32
        if d > 0:
            s = jnp.where(w_idx >= d, s, 0.0)             # zero the wrapped lanes
        o_ref[0, d] = s.astype(o_ref.dtype)               # lane-dense full-row store


# ------------------------------ wrapper -------------------------------------- #

def _pick_tile_h(C, H, W, D, budget_bytes=20 * 1024 * 1024):
    """Largest H-tile (multiple of 8, dividing H) whose double-buffered
    left + right + output tiles fit the VMEM budget (conservative for v7x)."""
    if H % 8 != 0:
        return H                       # full-dim block satisfies the (8,128) rule
    best = 8
    for th in range(8, H + 1, 8):
        if H % th:
            continue
        vmem = 2 * (2 * C * th * W + D * th * W) * 4      # double-buffered, f32
        if vmem <= budget_bytes:
            best = th
    return best


def psm_cosine_pallas(left, right, depth_channel, tile_h=None):
    """left/right: (B, C, H, W) f32  ->  cost: (B, depth_channel, H, W) f32."""
    B, C, H, W = left.shape
    if tile_h is None:
        tile_h = _pick_tile_h(C, H, W, depth_channel)
    assert H % tile_h == 0 and (tile_h % 8 == 0 or tile_h == H), (H, tile_h)

    kernel = functools.partial(_psm_cosine_kernel,
                               depth_channel=depth_channel,
                               num_channels=C)

    return pl.pallas_call(
        kernel,
        out_shape=jax.ShapeDtypeStruct((B, depth_channel, H, W), jnp.float32),
        grid_spec=pltpu.PrefetchScalarGridSpec(
            num_scalar_prefetch=0,
            grid=(B, H // tile_h),
            in_specs=[
                pl.BlockSpec((1, C, tile_h, W), lambda b, h: (b, 0, h, 0)),
                pl.BlockSpec((1, C, tile_h, W), lambda b, h: (b, 0, h, 0)),
            ],
            out_specs=pl.BlockSpec((1, depth_channel, tile_h, W),
                                   lambda b, h: (b, 0, h, 0)),
        ),
        compiler_params=pltpu.CompilerParams(
            dimension_semantics=("parallel", "parallel")),
    )(left, right)


# ------------------------------ reference ------------------------------------ #

def psm_cosine_ref(left, right, depth_channel):
    """Pure-JAX port of PSMCosineModule.forward."""
    B, C, H, W = left.shape
    cost = jnp.zeros((B, depth_channel, H, W), jnp.float32)
    for i in range(depth_channel):
        if i == 0:
            cost = cost.at[:, 0].set((left * right).mean(axis=1))
        else:
            cost = cost.at[:, i, :, i:].set(
                (left[:, :, :, i:] * right[:, :, :, :-i]).mean(axis=1))
    return cost


# ------------------------------- main ----------------------------------------- #

if __name__ == "__main__":
    # Small configuration consistent with the module:
    #   max_disp=32, downsample_scale=4 -> depth_channel = 8
    MAX_DISP = 32
    DOWN = 4
    DEPTH = MAX_DISP // DOWN                      # 8 disparity slices
    B, C, H, W = 2, 16, 16, 128                   # W on lanes (multiple of 128)

    key = jax.random.PRNGKey(0)
    k_l, k_r = jax.random.split(key, 2)
    left = jax.random.normal(k_l, (B, C, H, W), jnp.float32)
    right = jax.random.normal(k_r, (B, C, H, W), jnp.float32)

    fwd_pallas = jax.jit(functools.partial(
        psm_cosine_pallas, depth_channel=DEPTH, tile_h=8))
    fwd_ref = jax.jit(functools.partial(psm_cosine_ref, depth_channel=DEPTH))

    out = jax.block_until_ready(fwd_pallas(left, right))
    ref = jax.block_until_ready(fwd_ref(left, right))

    assert out.shape == (B, DEPTH, H, W), out.shape
    assert jnp.allclose(out, ref, rtol=1e-5, atol=1e-5), "mismatch vs JAX reference"

    print("KERNEL_OK")
</pallas_src>

<mosaic_0001>
module attributes {stable_mosaic.version = 11 : i64} {
  func.func @_psm_cosine_kernel(%arg0: i32, %arg1: i32, %arg2: memref<1x16x8x128xf32, #tpu.memory_space<vmem>>, %arg3: memref<1x16x8x128xf32, #tpu.memory_space<vmem>>, %arg4: memref<1x8x8x128xf32, #tpu.memory_space<vmem>>) attributes {dimension_semantics = [#tpu.dimension_semantics<parallel>, #tpu.dimension_semantics<parallel>], iteration_bounds = array<i64: 2, 2>, scalar_prefetch = 0 : i64, scratch_operands = 0 : i64, tpu.core_type = #tpu.core_type<tc>, window_params = [{transform_indices = @transform_0, window_bounds = array<i64: 1, 16, 8, 128>}, {transform_indices = @transform_1, window_bounds = array<i64: 1, 16, 8, 128>}, {transform_indices = @transform_2, window_bounds = array<i64: 1, 8, 8, 128>}]} {
    %c0 = arith.constant 0 : index
    %c0_0 = arith.constant 0 : index
    %c0_1 = arith.constant 0 : index
    %c0_2 = arith.constant 0 : index
    %0 = vector.load %arg2[%c0, %c0_0, %c0_1, %c0_2] : memref<1x16x8x128xf32, #tpu.memory_space<vmem>>, vector<1x16x8x128xf32>
    %1 = vector.shape_cast %0 : vector<1x16x8x128xf32> to vector<16x8x128xf32>
    %c0_3 = arith.constant 0 : index
    %c0_4 = arith.constant 0 : index
    %c0_5 = arith.constant 0 : index
    %c0_6 = arith.constant 0 : index
    %2 = vector.load %arg3[%c0_3, %c0_4, %c0_5, %c0_6] : memref<1x16x8x128xf32, #tpu.memory_space<vmem>>, vector<1x16x8x128xf32>
    %3 = vector.shape_cast %2 : vector<1x16x8x128xf32> to vector<16x8x128xf32>
    %4 = tpu.iota {dimensions = array<i32: 1>} : vector<8x128xi32>
    %5 = arith.mulf %1, %3 : vector<16x8x128xf32>
    %cst = arith.constant dense<0.000000e+00> : vector<8x128xf32>
    %6 = vector.multi_reduction <add>, %5, %cst [0] : vector<16x8x128xf32> to vector<8x128xf32>
    %cst_7 = arith.constant 6.250000e-02 : f32
    %7 = vector.broadcast %cst_7 : f32 to vector<8x128xf32>
    %8 = arith.mulf %6, %7 : vector<8x128xf32>
    %c0_8 = arith.constant 0 : index
    %c0_9 = arith.constant 0 : index
    %c0_10 = arith.constant 0 : index
    %c0_11 = arith.constant 0 : index
    %9 = vector.load %arg4[%c0_8, %c0_9, %c0_10, %c0_11] : memref<1x8x8x128xf32, #tpu.memory_space<vmem>>, vector<1x1x8x128xf32>
    %10 = vector.shape_cast %9 : vector<1x1x8x128xf32> to vector<8x128xf32>
    %11 = vector.shape_cast %8 : vector<8x128xf32> to vector<1x1x8x128xf32>
    tpu.vector_store %arg4[%c0_8, %c0_9, %c0_10, %c0_11], %11 {strides = array<i32>} : memref<1x8x8x128xf32, #tpu.memory_space<vmem>>, vector<1x1x8x128xf32>,
    %c1_i32 = arith.constant 1 : i32
    %12 = tpu.dynamic_rotate %3 by %c1_i32 dim 2 : vector<16x8x128xf32>, i32 -> vector<16x8x128xf32>
    %13 = arith.mulf %1, %12 : vector<16x8x128xf32>
    %cst_12 = arith.constant dense<0.000000e+00> : vector<8x128xf32>
    %14 = vector.multi_reduction <add>, %13, %cst_12 [0] : vector<16x8x128xf32> to vector<8x128xf32>
    %cst_13 = arith.constant 6.250000e-02 : f32
    %15 = vector.broadcast %cst_13 : f32 to vector<8x128xf32>
    %16 = arith.mulf %14, %15 : vector<8x128xf32>
    %c1_i32_14 = arith.constant 1 : i32
    %17 = vector.broadcast %c1_i32_14 : i32 to vector<8x128xi32>
    %18 = arith.cmpi sge, %4, %17 : vector<8x128xi32>
    %cst_15 = arith.constant 0.000000e+00 : f32
    %19 = vector.broadcast %cst_15 : f32 to vector<8x128xf32>
    %20 = arith.select %18, %16, %19 : vector<8x128xi1>, vector<8x128xf32>
    %c0_16 = arith.constant 0 : index
    %c1 = arith.constant 1 : index
    %c0_17 = arith.constant 0 : index
    %c0_18 = arith.constant 0 : index
    %21 = vector.load %arg4[%c0_16, %c1, %c0_17, %c0_18] : memref<1x8x8x128xf32, #tpu.memory_space<vmem>>, vector<1x1x8x128xf32>
    %22 = vector.shape_cast %21 : vector<1x1x8x128xf32> to vector<8x128xf32>
    %23 = vector.shape_cast %20 : vector<8x128xf32> to vector<1x1x8x128xf32>
    tpu.vector_store %arg4[%c0_16, %c1, %c0_17, %c0_18], %23 {strides = array<i32>} : memref<1x8x8x128xf32, #tpu.memory_space<vmem>>, vector<1x1x8x128xf32>,
    %c2_i32 = arith.constant 2 : i32
    %24 = tpu.dynamic_rotate %3 by %c2_i32 dim 2 : vector<16x8x128xf32>, i32 -> vector<16x8x128xf32>
    %25 = arith.mulf %1, %24 : vector<16x8x128xf32>
    %cst_19 = arith.constant dense<0.000000e+00> : vector<8x128xf32>
    %26 = vector.multi_reduction <add>, %25, %cst_19 [0] : vector<16x8x128xf32> to vector<8x128xf32>
    %cst_20 = arith.constant 6.250000e-02 : f32
    %27 = vector.broadcast %cst_20 : f32 to vector<8x128xf32>
    %28 = arith.mulf %26, %27 : vector<8x128xf32>
    %c2_i32_21 = arith.constant 2 : i32
    %29 = vector.broadcast %c2_i32_21 : i32 to vector<8x128xi32>
    %30 = arith.cmpi sge, %4, %29 : vector<8x128xi32>
    %cst_22 = arith.constant 0.000000e+00 : f32
    %31 = vector.broadcast %cst_22 : f32 to vector<8x128xf32>
    %32 = arith.select %30, %28, %31 : vector<8x128xi1>, vector<8x128xf32>
    %c0_23 = arith.constant 0 : index
    %c2 = arith.constant 2 : index
    %c0_24 = arith.constant 0 : index
    %c0_25 = arith.constant 0 : index
    %33 = vector.load %arg4[%c0_23, %c2, %c0_24, %c0_25] : memref<1x8x8x128xf32, #tpu.memory_space<vmem>>, vector<1x1x8x128xf32>
    %34 = vector.shape_cast %33 : vector<1x1x8x128xf32> to vector<8x128xf32>
    %35 = vector.shape_cast %32 : vector<8x128xf32> to vector<1x1x8x128xf32>
    tpu.vector_store %arg4[%c0_23, %c2, %c0_24, %c0_25], %35 {strides = array<i32>} : memref<1x8x8x128xf32, #tpu.memory_space<vmem>>, vector<1x1x8x128xf32>,
    %c3_i32 = arith.constant 3 : i32
    %36 = tpu.dynamic_rotate %3 by %c3_i32 dim 2 : vector<16x8x128xf32>, i32 -> vector<16x8x128xf32>
    %37 = arith.mulf %1, %36 : vector<16x8x128xf32>
    %cst_26 = arith.constant dense<0.000000e+00> : vector<8x128xf32>
    %38 = vector.multi_reduction <add>, %37, %cst_26 [0] : vector<16x8x128xf32> to vector<8x128xf32>
    %cst_27 = arith.constant 6.250000e-02 : f32
    %39 = vector.broadcast %cst_27 : f32 to vector<8x128xf32>
    %40 = arith.mulf %38, %39 : vector<8x128xf32>
    %c3_i32_28 = arith.constant 3 : i32
    %41 = vector.broadcast %c3_i32_28 : i32 to vector<8x128xi32>
    %42 = arith.cmpi sge, %4, %41 : vector<8x128xi32>
    %cst_29 = arith.constant 0.000000e+00 : f32
    %43 = vector.broadcast %cst_29 : f32 to vector<8x128xf32>
    %44 = arith.select %42, %40, %43 : vector<8x128xi1>, vector<8x128xf32>
    %c0_30 = arith.constant 0 : index
    %c3 = arith.constant 3 : index
    %c0_31 = arith.constant 0 : index
    %c0_32 = arith.constant 0 : index
    %45 = vector.load %arg4[%c0_30, %c3, %c0_31, %c0_32] : memref<1x8x8x128xf32, #tpu.memory_space<vmem>>, vector<1x1x8x128xf32>
    %46 = vector.shape_cast %45 : vector<1x1x8x128xf32> to vector<8x128xf32>
    %47 = vector.shape_cast %44 : vector<8x128xf32> to vector<1x1x8x128xf32>
    tpu.vector_store %arg4[%c0_30, %c3, %c0_31, %c0_32], %47 {strides = array<i32>} : memref<1x8x8x128xf32, #tpu.memory_space<vmem>>, vector<1x1x8x128xf32>,
    %c4_i32 = arith.constant 4 : i32
    %48 = tpu.dynamic_rotate %3 by %c4_i32 dim 2 : vector<16x8x128xf32>, i32 -> vector<16x8x128xf32>
    %49 = arith.mulf %1, %48 : vector<16x8x128xf32>
    %cst_33 = arith.constant dense<0.000000e+00> : vector<8x128xf32>
    %50 = vector.multi_reduction <add>, %49, %cst_33 [0] : vector<16x8x128xf32> to vector<8x128xf32>
    %cst_34 = arith.constant 6.250000e-02 : f32
    %51 = vector.broadcast %cst_34 : f32 to vector<8x128xf32>
    %52 = arith.mulf %50, %51 : vector<8x128xf32>
    %c4_i32_35 = arith.constant 4 : i32
    %53 = vector.broadcast %c4_i32_35 : i32 to vector<8x128xi32>
    %54 = arith.cmpi sge, %4, %53 : vector<8x128xi32>
    %cst_36 = arith.constant 0.000000e+00 : f32
    %55 = vector.broadcast %cst_36 : f32 to vector<8x128xf32>
    %56 = arith.select %54, %52, %55 : vector<8x128xi1>, vector<8x128xf32>
    %c0_37 = arith.constant 0 : index
    %c4 = arith.constant 4 : index
    %c0_38 = arith.constant 0 : index
    %c0_39 = arith.constant 0 : index
    %57 = vector.load %arg4[%c0_37, %c4, %c0_38, %c0_39] : memref<1x8x8x128xf32, #tpu.memory_space<vmem>>, vector<1x1x8x128xf32>
    %58 = vector.shape_cast %57 : vector<1x1x8x128xf32> to vector<8x128xf32>
    %59 = vector.shape_cast %56 : vector<8x128xf32> to vector<1x1x8x128xf32>
    tpu.vector_store %arg4[%c0_37, %c4, %c0_38, %c0_39], %59 {strides = array<i32>} : memref<1x8x8x128xf32, #tpu.memory_space<vmem>>, vector<1x1x8x128xf32>,
    %c5_i32 = arith.constant 5 : i32
    %60 = tpu.dynamic_rotate %3 by %c5_i32 dim 2 : vector<16x8x128xf32>, i32 -> vector<16x8x128xf32>
    %61 = arith.mulf %1, %60 : vector<16x8x128xf32>
    %cst_40 = arith.constant dense<0.000000e+00> : vector<8x128xf32>
    %62 = vector.multi_reduction <add>, %61, %cst_40 [0] : vector<16x8x128xf32> to vector<8x128xf32>
    %cst_41 = arith.constant 6.250000e-02 : f32
    %63 = vector.broadcast %cst_41 : f32 to vector<8x128xf32>
    %64 = arith.mulf %62, %63 : vector<8x128xf32>
    %c5_i32_42 = arith.constant 5 : i32
    %65 = vector.broadcast %c5_i32_42 : i32 to vector<8x128xi32>
    %66 = arith.cmpi sge, %4, %65 : vector<8x128xi32>
    %cst_43 = arith.constant 0.000000e+00 : f32
    %67 = vector.broadcast %cst_43 : f32 to vector<8x128xf32>
    %68 = arith.select %66, %64, %67 : vector<8x128xi1>, vector<8x128xf32>
    %c0_44 = arith.constant 0 : index
    %c5 = arith.constant 5 : index
    %c0_45 = arith.constant 0 : index
    %c0_46 = arith.constant 0 : index
    %69 = vector.load %arg4[%c0_44, %c5, %c0_45, %c0_46] : memref<1x8x8x128xf32, #tpu.memory_space<vmem>>, vector<1x1x8x128xf32>
    %70 = vector.shape_cast %69 : vector<1x1x8x128xf32> to vector<8x128xf32>
    %71 = vector.shape_cast %68 : vector<8x128xf32> to vector<1x1x8x128xf32>
    tpu.vector_store %arg4[%c0_44, %c5, %c0_45, %c0_46], %71 {strides = array<i32>} : memref<1x8x8x128xf32, #tpu.memory_space<vmem>>, vector<1x1x8x128xf32>,
    %c6_i32 = arith.constant 6 : i32
    %72 = tpu.dynamic_rotate %3 by %c6_i32 dim 2 : vector<16x8x128xf32>, i32 -> vector<16x8x128xf32>
    %73 = arith.mulf %1, %72 : vector<16x8x128xf32>
    %cst_47 = arith.constant dense<0.000000e+00> : vector<8x128xf32>
    %74 = vector.multi_reduction <add>, %73, %cst_47 [0] : vector<16x8x128xf32> to vector<8x128xf32>
    %cst_48 = arith.constant 6.250000e-02 : f32
    %75 = vector.broadcast %cst_48 : f32 to vector<8x128xf32>
    %76 = arith.mulf %74, %75 : vector<8x128xf32>
    %c6_i32_49 = arith.constant 6 : i32
    %77 = vector.broadcast %c6_i32_49 : i32 to vector<8x128xi32>
    %78 = arith.cmpi sge, %4, %77 : vector<8x128xi32>
    %cst_50 = arith.constant 0.000000e+00 : f32
    %79 = vector.broadcast %cst_50 : f32 to vector<8x128xf32>
    %80 = arith.select %78, %76, %79 : vector<8x128xi1>, vector<8x128xf32>
    %c0_51 = arith.constant 0 : index
    %c6 = arith.constant 6 : index
    %c0_52 = arith.constant 0 : index
    %c0_53 = arith.constant 0 : index
    %81 = vector.load %arg4[%c0_51, %c6, %c0_52, %c0_53] : memref<1x8x8x128xf32, #tpu.memory_space<vmem>>, vector<1x1x8x128xf32>
    %82 = vector.shape_cast %81 : vector<1x1x8x128xf32> to vector<8x128xf32>
    %83 = vector.shape_cast %80 : vector<8x128xf32> to vector<1x1x8x128xf32>
    tpu.vector_store %arg4[%c0_51, %c6, %c0_52, %c0_53], %83 {strides = array<i32>} : memref<1x8x8x128xf32, #tpu.memory_space<vmem>>, vector<1x1x8x128xf32>,
    %c7_i32 = arith.constant 7 : i32
    %84 = tpu.dynamic_rotate %3 by %c7_i32 dim 2 : vector<16x8x128xf32>, i32 -> vector<16x8x128xf32>
    %85 = arith.mulf %1, %84 : vector<16x8x128xf32>
    %cst_54 = arith.constant dense<0.000000e+00> : vector<8x128xf32>
    %86 = vector.multi_reduction <add>, %85, %cst_54 [0] : vector<16x8x128xf32> to vector<8x128xf32>
    %cst_55 = arith.constant 6.250000e-02 : f32
    %87 = vector.broadcast %cst_55 : f32 to vector<8x128xf32>
    %88 = arith.mulf %86, %87 : vector<8x128xf32>
    %c7_i32_56 = arith.constant 7 : i32
    %89 = vector.broadcast %c7_i32_56 : i32 to vector<8x128xi32>
    %90 = arith.cmpi sge, %4, %89 : vector<8x128xi32>
    %cst_57 = arith.constant 0.000000e+00 : f32
    %91 = vector.broadcast %cst_57 : f32 to vector<8x128xf32>
    %92 = arith.select %90, %88, %91 : vector<8x128xi1>, vector<8x128xf32>
    %c0_58 = arith.constant 0 : index
    %c7 = arith.constant 7 : index
    %c0_59 = arith.constant 0 : index
    %c0_60 = arith.constant 0 : index
    %93 = vector.load %arg4[%c0_58, %c7, %c0_59, %c0_60] : memref<1x8x8x128xf32, #tpu.memory_space<vmem>>, vector<1x1x8x128xf32>
    %94 = vector.shape_cast %93 : vector<1x1x8x128xf32> to vector<8x128xf32>
    %95 = vector.shape_cast %92 : vector<8x128xf32> to vector<1x1x8x128xf32>
    tpu.vector_store %arg4[%c0_58, %c7, %c0_59, %c0_60], %95 {strides = array<i32>} : memref<1x8x8x128xf32, #tpu.memory_space<vmem>>, vector<1x1x8x128xf32>,
    return
  }
  func.func @transform_0(%arg0: i32, %arg1: i32) -> (i32, i32, i32, i32) {
    %c0_i32 = arith.constant 0 : i32
    %c0_i32_0 = arith.constant 0 : i32
    %c0_i32_1 = arith.constant 0 : i32
    return %arg0, %c0_i32, %arg1, %c0_i32_0 : i32, i32, i32, i32
  }
  func.func @transform_1(%arg0: i32, %arg1: i32) -> (i32, i32, i32, i32) {
    %c0_i32 = arith.constant 0 : i32
    %c0_i32_0 = arith.constant 0 : i32
    %c0_i32_1 = arith.constant 0 : i32
    return %arg0, %c0_i32, %arg1, %c0_i32_0 : i32, i32, i32, i32
  }
  func.func @transform_2(%arg0: i32, %arg1: i32) -> (i32, i32, i32, i32) {
    %c0_i32 = arith.constant 0 : i32
    %c0_i32_0 = arith.constant 0 : i32
    %c0_i32_1 = arith.constant 0 : i32
    return %arg0, %c0_i32, %arg1, %c0_i32_0 : i32, i32, i32, i32
  }
}

</mosaic_0001>

<bundles_post_ra>
// kernel: psm_cosine_pallas.1
= control target key start
LH: loop header
LB: loop body
LE: loop exit
PB: predicated region body
PF: predicated region fallthrough
CT: control target
= control target key end

     0   :  { %s1916_s0 = inlined_call_operand.hbm [shape: f32[2,16,16,128], index: 0, kind: input, shape index: {}]   ;;  %s1917_s1 = inlined_call_operand.hbm [shape: f32[2,16,16,128], index: 1, kind: input, shape index: {}]   ;;  %s1918_s2 = inlined_call_operand.hbm [shape: f32[2,8,16,128], index: 2, kind: output, shape index: {}]  }
   0x1   :  { %1924 = sst [smem:[#allocation13_spill]] %s1916_s0 }
   0x2   :  { %7 = vsyncpa [#allocation3], 0 }
   0x3   :  { %9 = vsyncpa [#allocation3 + $0x1], 0 }
   0x4   :  { %10 = vsyncpa [#allocation6], 0 }
   0x5   :  { %12 = vsyncpa [#allocation6 + $0x1], 0 }
   0x6   :  { %13 = vsyncpa [#allocation4], 0 }
   0x7   :  { %15 = vsyncpa [#allocation4 + $0x1], 0  ;;  %s1210_s9 = smov 0   ;;  %s1212_s10 = smov 0  }
   0x8   :  { %s1214_s11 = smov 0   ;;  %s1216_s12 = smov 0  }
   0x9   :  { %s1218_s13 = smov 0   ;;  %s1220_s14 = smov 0  }
   0xa   :  { %s1222_s15 = smov 0   ;;  %s1224_s16 = smov 0  }
   0xb LB: > { %s893_s17 = sadd.s32 4294967295, %s1177_s16   ;;  %s894_s18 = sadd.s32 4294967294, %s1177_s16   ;;  %s1177_s16 = sphi %s1224_s16, %s21_s16   ;;  %s1173_s15 = sphi %s1222_s15, %s1946_s15   ;;  %s1169_s14 = sphi %s1220_s14, %s1945_s14   ;;  %s1165_s13 = sphi %s1218_s13, %s1944_s13   ;;  %s1161_s12 = sphi %s1216_s12, %s1943_s12   ;;  %s1157_s11 = sphi %s1214_s11, %s1942_s11   ;;  %s1153_s10 = sphi %s1212_s10, %s1941_s10   ;;  %s1149_s9 = sphi %s1210_s9, %s1940_s9  }
   0xc   : > { %s30_s19 = sadd.s32 1, %s1169_s14  ;;  %s33_s20 = sadd.s32 1, %s1173_s15 }
   0xd   : > { %p31_p0 = scmp.ge.s32.totalorder %s30_s19, 2  ;;  %s42_s21 = sadd.s32 1, %s1157_s11 }
   0xe   : > { %p49_p1 = scmp.ne.s32.totalorder %s1157_s11, %s1153_s10  ;;  %p50_p2 = scmp.eq.s32.totalorder %s1177_s16, 0 }
   0xf   : > { %s1948_s19 = smov (%p31_p0, %s30_s19), 0  ;;  %s1950_s20 = smov (!%p31_p0, %s33_s20), %s1173_s15 }
  0x10   : > { %1925 = sst [smem:[#allocation11_spill]] %s1948_s19  ;;  %s38_s22 = ssub.s32 %s1169_s14, %s1948_s19 }
  0x11   : > { %p1263_p3 = por %p50_p2, %p49_p1  ;;  %p35_p4 = scmp.ge.s32.totalorder %s1950_s20, 2 }
  0x12   : > { %p55_p5 = scmp.ne.s32.totalorder %s1153_s10, %s1149_s9  ;;  %p56_p6 = scmp.eq.s32.totalorder %s893_s17, 0 }
  0x13   : > { %p109_p7 = scmp.eq.s32.totalorder %s893_s17, 3  ;;  %s1952_s20 = smov (%p35_p4, %s1950_s20), 0 }
  0x14   : > { %1927 = sst [smem:[#allocation12_spill]] %s1952_s20  ;;  %p1271_p8 = por %p56_p6, %p55_p5 }
  0x15   : > { %p1275_p9 = por %p109_p7, %p49_p1  ;;  %s37_s26 = ssub.s32 %s1173_s15, %s1952_s20 }
  0x16   : > { %s1928_s24 = scalar_select %p1271_p8, 1, 0 }
  0x17   : > { %s1929_s25 = scalar_select %p1275_p9, 1, 0 }
  0x18   : > { %p115_p10 = scmp.eq.s32.totalorder %s894_s18, 3  ;;  %s39_s27 = sor.u32 %s38_s22, %s37_s26 }
  0x19   : > { %p40_p11 = scmp.eq.s32.totalorder %s39_s27, 0  ;;  %p936_p13 = scmp.lt.s32.totalorder %s1177_s16, 4 }
  0x1a   : > { %p1281_p12 = por %p115_p10, %p55_p5  ;;  %s1287_s29 = sand.u32 1, %s1157_s11  }
  0x1b   : > { %s1290_s30 = scalar_select %p40_p11, %s1157_s11, %s42_s21  }
  0x1c   : > { %s1930_s28 = scalar_select %p1281_p12, 1, 0 }
  0x1d   : > { %s1919_s3 = sshll.u32 %s1287_s29, 7  ;;  %s898_s4 = sshll.u32 %s1173_s15, 5 }
  0x1e   : > { %s1295_s5 = sadd.s32 %s1169_s14, %s898_s4  ;;  %s139_s6 = scalar_lea.vmem [#allocation2], %s1919_s3 }
  0x1f   : > { %s147_s7 = sshll.u32 %s139_s6, 4  ;;  %s899_s8 = sshll.u32 %s1295_s5, 7  ;;  %s1300_s7 = int_to_ptr.vmem [resolvable:$true] %s147_s7 }
  0x20   : > { %s1931_s0 = sld [smem:[#allocation13_spill]]  ;;  %p1311_p0 = pnand %p936_p13, %p1263_p3 }
  0x21   : > { %s136_s26 = scalar_lea.sflag [#allocation3], %s1287_s29 }
  0x22   : > { %p1017_p2 = pneg %p1311_p0 }
  0x26   : > { %s1307_s22 = scalar_lea.hbm %s1931_s0, %s899_s8  ;;  %s1020_s6 = scalar_lea.hbm %s1931_s0, 8192 }
  0x27   : > { %s1015_s27 = scalar_lea.hbm %s1307_s22, 2048  ;;  %p1021_p3 = scmp.lt.u32.totalorder %s1307_s22, %s1931_s0 }
  0x28   : > { %p1016_p1 = scmp.ne.s32.totalorder %s1307_s22, %s1015_s27  ;;  %p1022_p6 = scmp.lt.u32.totalorder %s1020_s6, %s1015_s27 }
  0x29   : > { %p1024_p10 = scmp.lt.u32.totalorder %s1015_s27, %s1307_s22 }
  0x2a   : > { %p1018_p4 = pnand %p1017_p2, %p1016_p1  ;;  %p1023_p7 = por %p1022_p6, %p1021_p3 }
  0x2c   : > { %p1019_p5 = pneg %p1018_p4  ;;  %p1025_p11 = por %p1024_p10, %p1023_p7 }
  0x2e   : > { %p1026_p13 = pnand %p1025_p11, %p1019_p5 }
  0x30   : > { %1029 = shalt.err (!%p1026_p13)
}
  0x31   : > { %s1030_s3 = scalar_lea.vmem %s1300_s7, 2048  ;;  %s1179_s23 = smov [#allocation2]  }
  0x32   : > { %p1031_p1 = scmp.ne.s32.totalorder %s1300_s7, %s1030_s3  ;;  %s1035_s4 = sshll.u32 %s1179_s23, 4  ;;  %s1036_s4 = int_to_ptr.vmem [resolvable:$false] %s1035_s4 }
  0x33   : > { %s1037_s17 = scalar_lea.vmem %s1036_s4, 4096  ;;  %p1038_p9 = scmp.lt.s32.totalorder %s1300_s7, %s1036_s4 }
  0x34   : > { %p1033_p4 = pnand %p1031_p1, %p1017_p2  ;;  %p1039_p3 = scmp.lt.s32.totalorder %s1037_s17, %s1030_s3 }
  0x36   : > { %p1034_p12 = pneg %p1033_p4  ;;  %p1040_p6 = por %p1039_p3, %p1038_p9 }
  0x38   : > { %p1041_p7 = pnand %p1040_p6, %p1034_p12 }
  0x3a   : > { %1044 = shalt.err (!%p1041_p7)
}
  0x3b   : > { %s1180_s27 = smov 256   ;;  %s1181_s6 = smov 128  }
  0x3c   : > { %s1182_s18 = smov 8   ;;  %p903_p9 = scmp.ge.s32.totalorder %s1177_s16, 1 }
  0x3d   : > { %928 = dma.hbm_to_vmem [thread:$0]  (!%p1311_p0), %s1307_s22, 2048, %s1300_s7, %s136_s26, %s1180_s27, %s1181_s6, %s1182_s18  }
  0x3e   : > { %p177_p12 = scmp.lt.s32.totalorder %s1177_s16, 5  ;;  %s1357_s17 = scalar_lea.hbm %s1917_s1, %s899_s8 }
  0x3f   : > { %s1934_s0 = sshll.u32 %s1287_s29, 7  ;;  %s158_s7 = scalar_lea.sflag [#allocation6], %s1287_s29 }
  0x40   : > { %p1348_p5 = pnand %p903_p9, %p177_p12  ;;  %s161_s20 = scalar_lea.vmem [#allocation5], %s1934_s0 }
  0x41   : > { %s169_s19 = sshll.u32 %s161_s20, 4  ;;  %s1045_s22 = scalar_lea.hbm %s1357_s17, 2048  ;;  %s1361_s19 = int_to_ptr.vmem [resolvable:$true] %s169_s19 }
  0x42   : > { %p1046_p10 = scmp.ne.s32.totalorder %s1357_s17, %s1045_s22  ;;  %s1050_s8 = scalar_lea.hbm %s1917_s1, 8192 }
  0x43   : > { %p1051_p1 = scmp.lt.u32.totalorder %s1357_s17, %s1917_s1  ;;  %p1052_p4 = scmp.lt.u32.totalorder %s1050_s8, %s1045_s22 }
  0x44   : > { %p1048_p11 = pnand %p1046_p10, %p1017_p2  ;;  %p1054_p6 = scmp.lt.u32.totalorder %s1045_s22, %s1357_s17 }
  0x45   : > { %p1053_p3 = por %p1052_p4, %p1051_p1 }
  0x46   : > { %p1049_p13 = pneg %p1048_p11 }
  0x47   : > { %p1055_p7 = por %p1054_p6, %p1053_p3 }
  0x49   : > { %p1056_p9 = pnand %p1055_p7, %p1049_p13 }
  0x4b   : > { %1059 = shalt.err (!%p1056_p9)
}
  0x4c   : > { %s1060_s0 = scalar_lea.vmem %s1361_s19, 2048  ;;  %s1183_s20 = smov [#allocation5]  }
  0x4d   : > { %p1061_p12 = scmp.ne.s32.totalorder %s1361_s19, %s1060_s0  ;;  %s1065_s5 = sshll.u32 %s1183_s20, 4  ;;  %s1066_s5 = int_to_ptr.vmem [resolvable:$false] %s1065_s5 }
  0x4e   : > { %s1067_s26 = scalar_lea.vmem %s1066_s5, 4096  ;;  %p1068_p8 = scmp.lt.s32.totalorder %s1361_s19, %s1066_s5 }
  0x4f   : > { %p1063_p10 = pnand %p1061_p12, %p1017_p2  ;;  %p1069_p1 = scmp.lt.s32.totalorder %s1067_s26, %s1060_s0 }
  0x51   : > { %p1064_p11 = pneg %p1063_p10  ;;  %p1070_p4 = por %p1069_p1, %p1068_p8 }
  0x53   : > { %p1071_p3 = pnand %p1070_p4, %p1064_p11 }
  0x55   : > { %1074 = shalt.err (!%p1071_p3)
}
  0x56   : > { %931 = dma.hbm_to_vmem [thread:$0]  (!%p1311_p0), %s1357_s17, 2048, %s1361_s19, %s158_s7, %s1180_s27, %s1181_s6, %s1182_s18  }
  0x57   : > { %181 = sbr.rel (%p1348_p5) target bundleno = 456 (0x1c8), region = 28  ;;  %s1395_s22 = sand.u32 (!%p1348_p5), 1, %s1153_s10  }
  0x58   : > { %s904_s8 = sshll.u32 (!%p1348_p5), %s1395_s22, 7  ;;  %s184_s23 = scalar_lea.sflag (!%p1348_p5), [#allocation3], %s1395_s22 }
  0x59   : > { %s1399_s21 = scalar_lea.vmem (!%p1348_p5), [#allocation2], %s904_s8  ;;  %p1935_p8 = scmp.ne.s32.totalorder (!%p1348_p5), %s1928_s24, 0 }
  0x5e   : > { %1136 = dma.done.wait (%p1935_p8), %s184_s23, 2048  }
  0x5f   : > { %1138 = vsyncadd (%p1935_p8), %s184_s23, 4294965248  ;;  %s193_s19 = scalar_lea.sflag [#allocation6], %s1395_s22  ;;  %s1406_s29 = scalar_lea.vmem [#allocation5], %s904_s8 }
  0x60   : > { %1140 = dma.done.wait (%p1935_p8), %s193_s19, 2048  }
  0x61   : > { %1142 = vsyncadd (%p1935_p8), %s193_s19, 4294965248  ;;  %v1413_v0 = vld [vmem:[%s1406_s29 + $0x10] sm:$0xff]  ;;  %v1416_v1 = vld [vmem:[%s1406_s29] sm:$0xff]  ;;  %s1184_s27 = smov 1   ;;  %s1185_s24 = smov 2  }
  0x62   : > { %293 = vrot.lane.b32.xlu1 %v1413_v0, %s1184_s27  ;;  %289 = vrot.lane.b32.xlu0 %v1416_v1, %s1184_s27  ;;  %v1423_v2 = vld [vmem:[%s1406_s29 + $0x18] sm:$0xff]  ;;  %v1426_v3 = vld [vmem:[%s1406_s29 + $0x8] sm:$0xff]  ;;  %s906_s6 = sshll.u32 %s1395_s22, 6  ;;  %s1186_s3 = smov 3  }
  0x63   : > { %v1433_v4 = vld [vmem:[%s1406_s29 + $0x28] sm:$0xff]  ;;  %v1436_v5 = vld [vmem:[%s1406_s29 + $0x20] sm:$0xff]  ;;  %v1442_v7 = vld [vmem:[%s1399_s21 + $0x10] sm:$0xff]  ;;  %s1579_s18 = scalar_lea.vmem [#allocation7], %s906_s6  ;;  %s1187_s17 = smov 4  }
  0x64   : > { %v1439_v6 = vld [vmem:[%s1399_s21] sm:$0xff]  ;;  %v1447_v9 = vld [vmem:[%s1399_s21 + $0x8] sm:$0xff]  ;;  %v258_v10 = vmul.f32 %v1413_v0, %v1442_v7  ;;  %v1458_v12 = vld [vmem:[%s1399_s21 + $0x18] sm:$0xff]  ;;  %s1188_s7 = smov 5   ;;  %s1189_s4 = smov 6  }
  0x65   : > { %v256_v8 = vmul.f32 %v1416_v1, %v1439_v6  ;;  %v257_v11 = vmul.f32 %v1426_v3, %v1447_v9  ;;  %v1461_v13 = vld [vmem:[%s1406_s29 + $0x38] sm:$0xff]  ;;  %v1464_v14 = vld [vmem:[%s1406_s29 + $0x30] sm:$0xff]  ;;  %v259_v15 = vmul.f32 %v1423_v2, %v1458_v12  ;;  %v1469_v17 = vld [vmem:[%s1399_s21 + $0x20] sm:$0xff]  ;;  %s1190_s0 = smov 7   ;;  %s915_s20 = sshll.u32 %s1165_s13, 4 }
  0x66   : > { %295 = vrot.lane.b32.xlu1 %v1423_v2, %s1184_s27  ;;  %291 = vrot.lane.b32.xlu0 %v1426_v3, %s1184_s27  ;;  %v260_v19 = vmul.f32 %v1436_v5, %v1469_v17  ;;  %v1478_v20 = vld [vmem:[%s1399_s21 + $0x28] sm:$0xff]  ;;  %v1484_v22 = vld [vmem:[%s1406_s29 + $0x40] sm:$0xff]  ;;  %s777_s5 = sadd.s32 %s1161_s12, %s915_s20  ;;  %s780_s26 = sshll.u32 %s1579_s18, 4  ;;  %s1852_s26 = int_to_ptr.vmem [resolvable:$true] %s780_s26 }
  0x67   : > { %v272_v16 = vadd.f32 %v257_v11, %v256_v8  ;;  %v1481_v21 = vld [vmem:[%s1406_s29 + $0x48] sm:$0xff]  ;;  %v261_v23 = vmul.f32 %v1433_v4, %v1478_v20  ;;  %v1489_v25 = vld [vmem:[%s1399_s21 + $0x30] sm:$0xff]  ;;  %v1498_v28 = vld [vmem:[%s1399_s21 + $0x38] sm:$0xff]  ;;  %s916_s13 = sshll.u32 %s777_s5, 7  ;;  %s1075_s19 = scalar_lea.vmem %s1852_s26, 1024 }
  0x68   : > { %v262_v27 = vmul.f32 %v1464_v14, %v1489_v25  ;;  %v1501_v29 = vld [vmem:[%s1406_s29 + $0x58] sm:$0xff]  ;;  %v1504_v30 = vld [vmem:[%s1406_s29 + $0x50] sm:$0xff]  ;;  %v263_v31 = vmul.f32 %v1461_v13, %v1498_v28  ;;  %v1509_v33 = vld [vmem:[%s1399_s21 + $0x40] sm:$0xff]  ;;  %s1860_s23 = scalar_lea.hbm %s1918_s2, %s916_s13  ;;  %p1076_p0 = scmp.ne.s32.totalorder %s1852_s26, %s1075_s19 }
  0x69   : > { %v273_v18 = vadd.f32 %v272_v16, %v258_v10  ;;  %v264_v35 = vmul.f32 %v1484_v22, %v1509_v33  ;;  %v1518_v36 = vld [vmem:[%s1399_s21 + $0x48] sm:$0xff]  ;;  %v1524_v38 = vld [vmem:[%s1406_s29 + $0x60] sm:$0xff]  ;;  %v1529_v41 = vld [vmem:[%s1399_s21 + $0x50] sm:$0xff]  ;;  %p1936_p2 = scmp.ne.s32.totalorder %s1929_s25, 0 }
  0x6a   : > { %299 = vrot.lane.b32.xlu1 %v1433_v4, %s1184_s27  ;;  %297 = vrot.lane.b32.xlu0 %v1436_v5, %s1184_s27  ;;  %v1521_v37 = vld [vmem:[%s1406_s29 + $0x68] sm:$0xff]  ;;  %v265_v39 = vmul.f32 %v1481_v21, %v1518_v36  ;;  %v266_v43 = vmul.f32 %v1504_v30, %v1529_v41  ;;  %v1538_v44 = vld [vmem:[%s1399_s21 + $0x58] sm:$0xff] }
  0x6b   : > { %v274_v24 = vadd.f32 %v273_v18, %v259_v15  ;;  %v1541_v45 = vld [vmem:[%s1406_s29 + $0x78] sm:$0xff]  ;;  %v1544_v46 = vld [vmem:[%s1406_s29 + $0x70] sm:$0xff]  ;;  %v267_v47 = vmul.f32 %v1501_v29, %v1538_v44  ;;  %v1549_v49 = vld [vmem:[%s1399_s21 + $0x60] sm:$0xff]  ;;  %p1077_p5 = pnand %p1076_p0, %p1936_p2  ;;  %s1191_s29 = smov [#allocation7]  }
  0x6c   : > { %v268_v51 = vmul.f32 %v1524_v38, %v1549_v49  ;;  %v1558_v52 = vld [vmem:[%s1399_s21 + $0x68] sm:$0xff]  ;;  %v1563_v55 = vld [vmem:[%s1399_s21 + $0x70] sm:$0xff]  ;;  %v1570_v58 = vld [vmem:[%s1399_s21 + $0x78] sm:$0xff]  ;;  %s766_s21 = scalar_lea.sflag [#allocation4], %s1395_s22 }
  0x6d   : > { %v275_v26 = vadd.f32 %v274_v24, %v260_v19  ;;  %v269_v53 = vmul.f32 %v1521_v37, %v1558_v52  ;;  %v270_v57 = vmul.f32 %v1544_v46, %v1563_v55  ;;  %v271_v59 = vmul.f32 %v1541_v45, %v1570_v58  ;;  %p1078_p13 = pneg %p1077_p5 }
  0x6e   : > { %303 = vrot.lane.b32.xlu1 %v1461_v13, %s1184_s27  ;;  %301 = vrot.lane.b32.xlu0 %v1464_v14, %s1184_s27 }
  0x6f   : > { %v276_v32 = vadd.f32 %v275_v26, %v261_v23 }
  0x71   : > { %v277_v34 = vadd.f32 %v276_v32, %v262_v27 }
  0x72   : > { %307 = vrot.lane.b32.xlu1 %v1481_v21, %s1184_s27  ;;  %305 = vrot.lane.b32.xlu0 %v1484_v22, %s1184_s27 }
  0x73   : > { %v278_v40 = vadd.f32 %v277_v34, %v263_v31 }
  0x75   : > { %v279_v42 = vadd.f32 %v278_v40, %v264_v35 }
  0x76   : > { %311 = vrot.lane.b32.xlu1 %v1501_v29, %s1184_s27  ;;  %309 = vrot.lane.b32.xlu0 %v1504_v30, %s1184_s27 }
  0x77   : > { %v280_v48 = vadd.f32 %v279_v42, %v265_v39 }
  0x79   : > { %v281_v50 = vadd.f32 %v280_v48, %v266_v43 }
  0x7a   : > { %315 = vrot.lane.b32.xlu1 %v1521_v37, %s1184_s27  ;;  %313 = vrot.lane.b32.xlu0 %v1524_v38, %s1184_s27 }
  0x7b   : > { %v282_v54 = vadd.f32 %v281_v50, %v267_v47 }
  0x7d   : > { %v283_v56 = vadd.f32 %v282_v54, %v268_v51 }
  0x7e   : > { %319 = vrot.lane.b32.xlu1 %v1541_v45, %s1184_s27  ;;  %317 = vrot.lane.b32.xlu0 %v1544_v46, %s1184_s27  ;;  %s1079_s27 = sshll.u32 %s1191_s29, 4  ;;  %s1080_s27 = int_to_ptr.vmem [resolvable:$false] %s1079_s27 }
  0x7f   : > { %v284_v60 = vadd.f32 %v283_v56, %v269_v53  ;;  %p1082_p6 = scmp.lt.s32.totalorder %s1852_s26, %s1080_s27 }
  0x81   : > { %v285_v61 = vadd.f32 %v284_v60, %v270_v57 }
  0x82   : > { %359 = vrot.lane.b32.xlu1 %v1426_v3, %s1185_s24  ;;  %357 = vrot.lane.b32.xlu0 %v1416_v1, %s1185_s24 }
  0x83   : > { %v286_v62 = vadd.f32 %v285_v61, %v271_v59 }
  0x85   : > { %v287_v63 = vmul.f32 0.0625, %v286_v62 }
  0x86   : > { %363 = vrot.lane.b32.xlu1 %v1423_v2, %s1185_s24  ;;  %361 = vrot.lane.b32.xlu0 %v1413_v0, %s1185_s24 }
  0x87   : > { %288 = vst [vmem:[%s1579_s18] sm:$0xff] %v287_v63 }
  0x8a   : > { %367 = vrot.lane.b32.xlu1 %v1433_v4, %s1185_s24  ;;  %365 = vrot.lane.b32.xlu0 %v1436_v5, %s1185_s24 }
  0x8e   : > { %371 = vrot.lane.b32.xlu1 %v1461_v13, %s1185_s24  ;;  %369 = vrot.lane.b32.xlu0 %v1464_v14, %s1185_s24 }
  0x92   : > { %375 = vrot.lane.b32.xlu1 %v1481_v21, %s1185_s24  ;;  %373 = vrot.lane.b32.xlu0 %v1484_v22, %s1185_s24 }
  0x96   : > { %379 = vrot.lane.b32.xlu1 %v1501_v29, %s1185_s24  ;;  %377 = vrot.lane.b32.xlu0 %v1504_v30, %s1185_s24 }
  0x9a   : > { %383 = vrot.lane.b32.xlu1 %v1521_v37, %s1185_s24  ;;  %381 = vrot.lane.b32.xlu0 %v1524_v38, %s1185_s24 }
  0x9e   : > { %387 = vrot.lane.b32.xlu1 %v1541_v45, %s1185_s24  ;;  %385 = vrot.lane.b32.xlu0 %v1544_v46, %s1185_s24  ;;  %s1081_s24 = scalar_lea.vmem %s1080_s27, 2048 }
  0x9f   : > { %p1083_p7 = scmp.lt.s32.totalorder %s1081_s24, %s1075_s19 }
  0xa1   : > { %p1084_p9 = por %p1083_p7, %p1082_p6 }
  0xa2   : > { %427 = vrot.lane.b32.xlu1 %v1426_v3, %s1186_s3  ;;  %425 = vrot.lane.b32.xlu0 %v1416_v1, %s1186_s3 }
  0xa3   : > { %p1085_p12 = pnand %p1084_p9, %p1078_p13 }
  0xa6   : > { %431 = vrot.lane.b32.xlu1 %v1423_v2, %s1186_s3  ;;  %429 = vrot.lane.b32.xlu0 %v1413_v0, %s1186_s3 }
  0xaa   : > { %435 = vrot.lane.b32.xlu1 %v1433_v4, %s1186_s3  ;;  %433 = vrot.lane.b32.xlu0 %v1436_v5, %s1186_s3 }
  0xae   : > { %439 = vrot.lane.b32.xlu1 %v1461_v13, %s1186_s3  ;;  %437 = vrot.lane.b32.xlu0 %v1464_v14, %s1186_s3 }
  0xb2   : > { %443 = vrot.lane.b32.xlu1 %v1481_v21, %s1186_s3  ;;  %441 = vrot.lane.b32.xlu0 %v1484_v22, %s1186_s3 }
  0xb6   : > { %447 = vrot.lane.b32.xlu1 %v1501_v29, %s1186_s3  ;;  %445 = vrot.lane.b32.xlu0 %v1504_v30, %s1186_s3 }
  0xba   : > { %451 = vrot.lane.b32.xlu1 %v1521_v37, %s1186_s3  ;;  %449 = vrot.lane.b32.xlu0 %v1524_v38, %s1186_s3 }
  0xbe   : > { %455 = vrot.lane.b32.xlu1 %v1541_v45, %s1186_s3  ;;  %453 = vrot.lane.b32.xlu0 %v1544_v46, %s1186_s3 }
  0xc2   : > { %495 = vrot.lane.b32.xlu1 %v1426_v3, %s1187_s17  ;;  %493 = vrot.lane.b32.xlu0 %v1416_v1, %s1187_s17 }
  0xc6   : > { %499 = vrot.lane.b32.xlu1 %v1423_v2, %s1187_s17  ;;  %497 = vrot.lane.b32.xlu0 %v1413_v0, %s1187_s17 }
  0xca   : > { %503 = vrot.lane.b32.xlu1 %v1433_v4, %s1187_s17  ;;  %501 = vrot.lane.b32.xlu0 %v1436_v5, %s1187_s17 }
  0xce   : > { %507 = vrot.lane.b32.xlu1 %v1461_v13, %s1187_s17  ;;  %505 = vrot.lane.b32.xlu0 %v1464_v14, %s1187_s17 }
  0xd2   : > { %511 = vrot.lane.b32.xlu1 %v1481_v21, %s1187_s17  ;;  %509 = vrot.lane.b32.xlu0 %v1484_v22, %s1187_s17 }
  0xd4   : > { %v294_v8 = vpop.permute.xlu1 %293  ;;  %v290_v10 = vpop.permute.xlu0 %289 }
  0xd5   : > { %v321_v16 = vmul.f32 %v290_v10, %v1439_v6  ;;  %v323_v19 = vmul.f32 %v294_v8, %v1442_v7 }
  0xd6   : > { %515 = vrot.lane.b32.xlu1 %v1501_v29, %s1187_s17  ;;  %513 = vrot.lane.b32.xlu0 %v1504_v30, %s1187_s17 }
  0xd8   : > { %v296_v11 = vpop.permute.xlu1 %295  ;;  %v292_v15 = vpop.permute.xlu0 %291 }
  0xd9   : > { %v322_v18 = vmul.f32 %v292_v15, %v1447_v9  ;;  %v324_v27 = vmul.f32 %v296_v11, %v1458_v12 }
  0xda   : > { %519 = vrot.lane.b32.xlu1 %v1521_v37, %s1187_s17  ;;  %517 = vrot.lane.b32.xlu0 %v1524_v38, %s1187_s17 }
  0xdb   : > { %v337_v23 = vadd.f32 %v322_v18, %v321_v16 }
  0xdc   : > { %v300_v24 = vpop.permute.xlu1 %299  ;;  %v298_v26 = vpop.permute.xlu0 %297 }
  0xdd   : > { %v338_v31 = vadd.f32 %v337_v23, %v323_v19  ;;  %v325_v32 = vmul.f32 %v298_v26, %v1469_v17  ;;  %v326_v40 = vmul.f32 %v300_v24, %v1478_v20  ;;  %v254_v19 = vlaneseq }
  0xde   : > { %523 = vrot.lane.b32.xlu1 %v1541_v45, %s1187_s17  ;;  %521 = vrot.lane.b32.xlu0 %v1544_v46, %s1187_s17 }
  0xdf   : > { %v339_v34 = vadd.f32 %v338_v31, %v324_v27  ;;  %v1659_v31 = vand.u32 127, %v254_v19 }
  0xe0   : > { %v304_v35 = vpop.permute.xlu1 %303  ;;  %v302_v39 = vpop.permute.xlu0 %301 }
  0xe1   : > { %v340_v42 = vadd.f32 %v339_v34, %v325_v32  ;;  %v327_v43 = vmul.f32 %v302_v39, %v1489_v25  ;;  %v328_v51 = vmul.f32 %v304_v35, %v1498_v28  ;;  %vm353_vm0 = vcmp.ge.s32.totalorder %v1659_v31, 1 }
  0xe2   : > { %563 = vrot.lane.b32.xlu1 %v1426_v3, %s1188_s7  ;;  %561 = vrot.lane.b32.xlu0 %v1416_v1, %s1188_s7  ;;  %vm421_vm1 = vcmp.ge.s32.totalorder %v1659_v31, 2  ;;  %vm489_vm2 = vcmp.ge.s32.totalorder %v1659_v31, 3  ;;  %vm557_vm3 = vcmp.ge.s32.totalorder %v1659_v31, 4  ;;  %vm625_vm4 = vcmp.ge.s32.totalorder %v1659_v31, 5 }
  0xe3   : > { %v341_v47 = vadd.f32 %v340_v42, %v326_v40  ;;  %vm761_vm5 = vcmp.ge.s32.totalorder %v1659_v31, 7  ;;  %vm693_vm6 = vcmp.ge.s32.totalorder %v1659_v31, 6 }
  0xe4   : > { %v308_v48 = vpop.permute.xlu1 %307  ;;  %v306_v50 = vpop.permute.xlu0 %305 }
  0xe5   : > { %v342_v53 = vadd.f32 %v341_v47, %v327_v43  ;;  %v329_v54 = vmul.f32 %v306_v50, %v1509_v33  ;;  %v330_v60 = vmul.f32 %v308_v48, %v1518_v36 }
  0xe6   : > { %631 = vrot.lane.b32.xlu1 %v1426_v3, %s1189_s4  ;;  %629 = vrot.lane.b32.xlu0 %v1416_v1, %s1189_s4 }
  0xe7   : > { %v343_v56 = vadd.f32 %v342_v53, %v328_v51 }
  0xe8   : > { %v312_v57 = vpop.permute.xlu1 %311  ;;  %v310_v59 = vpop.permute.xlu0 %309 }
  0xe9   : > { %v344_v61 = vadd.f32 %v343_v56, %v329_v54  ;;  %v331_v62 = vmul.f32 %v310_v59, %v1529_v41  ;;  %v332_v11 = vmul.f32 %v312_v57, %v1538_v44 }
  0xea   : > { %699 = vrot.lane.b32.xlu1 %v1426_v3, %s1190_s0  ;;  %697 = vrot.lane.b32.xlu0 %v1416_v1, %s1190_s0 }
  0xeb   : > { %v345_v63 = vadd.f32 %v344_v61, %v330_v60 }
  0xec   : > { %v316_v8 = vpop.permute.xlu1 %315  ;;  %v314_v10 = vpop.permute.xlu0 %313 }
  0xed   : > { %v346_v15 = vadd.f32 %v345_v63, %v331_v62  ;;  %v333_v16 = vmul.f32 %v314_v10, %v1549_v49  ;;  %v334_v23 = vmul.f32 %v316_v8, %v1558_v52 }
  0xee   : > { %633 = vrot.lane.b32.xlu1 %v1413_v0, %s1189_s4  ;;  %565 = vrot.lane.b32.xlu0 %v1413_v0, %s1188_s7 }
  0xef   : > { %v347_v3 = vadd.f32 %v346_v15, %v332_v11 }
  0xf0   : > { %v320_v18 = vpop.permute.xlu1 %319  ;;  %v318_v1 = vpop.permute.xlu0 %317 }
  0xf1   : > { %v348_v24 = vadd.f32 %v347_v3, %v333_v16  ;;  %v335_v26 = vmul.f32 %v318_v1, %v1563_v55  ;;  %v336_v35 = vmul.f32 %v320_v18, %v1570_v58 }
  0xf2   : > { %567 = vrot.lane.b32.xlu1 %v1423_v2, %s1188_s7  ;;  %701 = vrot.lane.b32.xlu0 %v1413_v0, %s1190_s0 }
  0xf3   : > { %v349_v27 = vadd.f32 %v348_v24, %v334_v23 }
  0xf4   : > { %v360_v32 = vpop.permute.xlu1 %359  ;;  %v358_v34 = vpop.permute.xlu0 %357 }
  0xf5   : > { %v350_v39 = vadd.f32 %v349_v27, %v335_v26  ;;  %v390_v40 = vmul.f32 %v360_v32, %v1447_v9  ;;  %v389_v42 = vmul.f32 %v358_v34, %v1439_v6 }
  0xf6   : > { %703 = vrot.lane.b32.xlu1 %v1423_v2, %s1190_s0  ;;  %635 = vrot.lane.b32.xlu0 %v1423_v2, %s1189_s4 }
  0xf7   : > { %v351_v0 = vadd.f32 %v350_v39, %v336_v35  ;;  %v405_v50 = vadd.f32 %v390_v40, %v389_v42 }
  0xf8   : > { %v364_v43 = vpop.permute.xlu1 %363  ;;  %v362_v47 = vpop.permute.xlu0 %361 }
  0xf9   : > { %v352_v48 = vmul.f32 0.0625, %v351_v0  ;;  %v391_v51 = vmul.f32 %v362_v47, %v1442_v7  ;;  %v392_v54 = vmul.f32 %v364_v43, %v1458_v12 }
  0xfa   : > { %637 = vrot.lane.b32.xlu1 %v1436_v5, %s1189_s4  ;;  %569 = vrot.lane.b32.xlu0 %v1436_v5, %s1188_s7 }
  0xfb   : > { %v354_v53 = vsel %vm353_vm0, %v352_v48, 0.0  ;;  %v406_v56 = vadd.f32 %v405_v50, %v391_v51 }
  0xfc   : > { %907 = vst [vmem:[%s1579_s18 + $0x8] sm:$0xff] %v354_v53  ;;  %v368_v2 = vpop.permute.xlu1 %367  ;;  %v366_v57 = vpop.permute.xlu0 %365 }
  0xfd   : > { %v393_v59 = vmul.f32 %v366_v57, %v1469_v17  ;;  %v407_v60 = vadd.f32 %v406_v56, %v392_v54  ;;  %v394_v61 = vmul.f32 %v368_v2, %v1478_v20 }
  0xfe   : > { %571 = vrot.lane.b32.xlu1 %v1433_v4, %s1188_s7  ;;  %705 = vrot.lane.b32.xlu0 %v1436_v5, %s1190_s0 }
  0xff   : > { %v408_v62 = vadd.f32 %v407_v60, %v393_v59 }
 0x100   : > { %v372_v63 = vpop.permute.xlu1 %371  ;;  %v370_v8 = vpop.permute.xlu0 %369 }
 0x101   : > { %v395_v10 = vmul.f32 %v370_v8, %v1489_v25  ;;  %v409_v11 = vadd.f32 %v408_v62, %v394_v61  ;;  %v396_v15 = vmul.f32 %v372_v63, %v1498_v28 }
 0x102   : > { %707 = vrot.lane.b32.xlu1 %v1433_v4, %s1190_s0  ;;  %639 = vrot.lane.b32.xlu0 %v1433_v4, %s1189_s4 }
 0x103   : > { %v410_v16 = vadd.f32 %v409_v11, %v395_v10 }
 0x104   : > { %v376_v3 = vpop.permute.xlu1 %375  ;;  %v374_v18 = vpop.permute.xlu0 %373 }
 0x105   : > { %v397_v5 = vmul.f32 %v374_v18, %v1509_v33  ;;  %v411_v19 = vadd.f32 %v410_v16, %v396_v15  ;;  %v398_v1 = vmul.f32 %v376_v3, %v1518_v36 }
 0x106   : > { %641 = vrot.lane.b32.xlu1 %v1464_v14, %s1189_s4  ;;  %573 = vrot.lane.b32.xlu0 %v1464_v14, %s1188_s7 }
 0x107   : > { %v412_v23 = vadd.f32 %v411_v19, %v397_v5 }
 0x108   : > { %v380_v24 = vpop.permute.xlu1 %379  ;;  %v378_v26 = vpop.permute.xlu0 %377 }
 0x109   : > { %v399_v4 = vmul.f32 %v378_v26, %v1529_v41  ;;  %v413_v27 = vadd.f32 %v412_v23, %v398_v1  ;;  %v400_v32 = vmul.f32 %v380_v24, %v1538_v44 }
 0x10a   : > { %575 = vrot.lane.b32.xlu1 %v1461_v13, %s1188_s7  ;;  %709 = vrot.lane.b32.xlu0 %v1464_v14, %s1190_s0 }
 0x10b   : > { %v414_v34 = vadd.f32 %v413_v27, %v399_v4 }
 0x10c   : > { %v384_v35 = vpop.permute.xlu1 %383  ;;  %v382_v39 = vpop.permute.xlu0 %381 }
 0x10d   : > { %v401_v40 = vmul.f32 %v382_v39, %v1549_v49  ;;  %v415_v42 = vadd.f32 %v414_v34, %v400_v32  ;;  %v402_v0 = vmul.f32 %v384_v35, %v1558_v52 }
 0x10e   : > { %711 = vrot.lane.b32.xlu1 %v1461_v13, %s1190_s0  ;;  %643 = vrot.lane.b32.xlu0 %v1461_v13, %s1189_s4 }
 0x10f   : > { %v416_v43 = vadd.f32 %v415_v42, %v401_v40 }
 0x110   : > { %v388_v47 = vpop.permute.xlu1 %387  ;;  %v386_v48 = vpop.permute.xlu0 %385 }
 0x111   : > { %v403_v14 = vmul.f32 %v386_v48, %v1563_v55  ;;  %v417_v50 = vadd.f32 %v416_v43, %v402_v0  ;;  %v404_v51 = vmul.f32 %v388_v47, %v1570_v58 }
 0x112   : > { %645 = vrot.lane.b32.xlu1 %v1484_v22, %s1189_s4  ;;  %577 = vrot.lane.b32.xlu0 %v1484_v22, %s1188_s7 }
 0x113   : > { %v418_v53 = vadd.f32 %v417_v50, %v403_v14 }
 0x114   : > { %v428_v54 = vpop.permute.xlu1 %427  ;;  %v426_v13 = vpop.permute.xlu0 %425 }
 0x115   : > { %v419_v56 = vadd.f32 %v418_v53, %v404_v51  ;;  %v458_v2 = vmul.f32 %v428_v54, %v1447_v9  ;;  %v457_v57 = vmul.f32 %v426_v13, %v1439_v6 }
 0x116   : > { %579 = vrot.lane.b32.xlu1 %v1481_v21, %s1188_s7  ;;  %713 = vrot.lane.b32.xlu0 %v1484_v22, %s1190_s0 }
 0x117   : > { %v420_v59 = vmul.f32 0.0625, %v419_v56  ;;  %v473_v63 = vadd.f32 %v458_v2, %v457_v57 }
 0x118   : > { %v432_v60 = vpop.permute.xlu1 %431  ;;  %v430_v61 = vpop.permute.xlu0 %429 }
 0x119   : > { %v422_v62 = vsel %vm421_vm1, %v420_v59, 0.0  ;;  %v459_v8 = vmul.f32 %v430_v61, %v1442_v7  ;;  %v460_v10 = vmul.f32 %v432_v60, %v1458_v12 }
 0x11a   : > { %908 = vst [vmem:[%s1579_s18 + $0x10] sm:$0xff] %v422_v62  ;;  %715 = vrot.lane.b32.xlu1 %v1481_v21, %s1190_s0  ;;  %647 = vrot.lane.b32.xlu0 %v1481_v21, %s1189_s4 }
 0x11b   : > { %v474_v11 = vadd.f32 %v473_v63, %v459_v8 }
 0x11c   : > { %v436_v15 = vpop.permute.xlu1 %435  ;;  %v434_v16 = vpop.permute.xlu0 %433 }
 0x11d   : > { %v461_v22 = vmul.f32 %v434_v16, %v1469_v17  ;;  %v475_v3 = vadd.f32 %v474_v11, %v460_v10  ;;  %v462_v18 = vmul.f32 %v436_v15, %v1478_v20 }
 0x11e   : > { %649 = vrot.lane.b32.xlu1 %v1504_v30, %s1189_s4  ;;  %581 = vrot.lane.b32.xlu0 %v1504_v30, %s1188_s7 }
 0x11f   : > { %v476_v5 = vadd.f32 %v475_v3, %v461_v22 }
 0x120   : > { %v440_v19 = vpop.permute.xlu1 %439  ;;  %v438_v1 = vpop.permute.xlu0 %437 }
 0x121   : > { %v463_v21 = vmul.f32 %v438_v1, %v1489_v25  ;;  %v477_v23 = vadd.f32 %v476_v5, %v462_v18  ;;  %v464_v24 = vmul.f32 %v440_v19, %v1498_v28 }
 0x122   : > { %583 = vrot.lane.b32.xlu1 %v1501_v29, %s1188_s7  ;;  %717 = vrot.lane.b32.xlu0 %v1504_v30, %s1190_s0 }
 0x123   : > { %v478_v26 = vadd.f32 %v477_v23, %v463_v21 }
 0x124   : > { %v444_v4 = vpop.permute.xlu1 %443  ;;  %v442_v27 = vpop.permute.xlu0 %441 }
 0x125   : > { %v465_v32 = vmul.f32 %v442_v27, %v1509_v33  ;;  %v479_v34 = vadd.f32 %v478_v26, %v464_v24  ;;  %v466_v35 = vmul.f32 %v444_v4, %v1518_v36 }
 0x126   : > { %719 = vrot.lane.b32.xlu1 %v1501_v29, %s1190_s0  ;;  %651 = vrot.lane.b32.xlu0 %v1501_v29, %s1189_s4 }
 0x127   : > { %v480_v39 = vadd.f32 %v479_v34, %v465_v32 }
 0x128   : > { %v448_v40 = vpop.permute.xlu1 %447  ;;  %v446_v42 = vpop.permute.xlu0 %445 }
 0x129   : > { %v467_v30 = vmul.f32 %v446_v42, %v1529_v41  ;;  %v481_v0 = vadd.f32 %v480_v39, %v466_v35  ;;  %v468_v43 = vmul.f32 %v448_v40, %v1538_v44 }
 0x12a   : > { %653 = vrot.lane.b32.xlu1 %v1524_v38, %s1189_s4  ;;  %585 = vrot.lane.b32.xlu0 %v1524_v38, %s1188_s7 }
 0x12b   : > { %v482_v47 = vadd.f32 %v481_v0, %v467_v30 }
 0x12c   : > { %v452_v48 = vpop.permute.xlu1 %451  ;;  %v450_v14 = vpop.permute.xlu0 %449 }
 0x12d   : > { %v469_v29 = vmul.f32 %v450_v14, %v1549_v49  ;;  %v483_v50 = vadd.f32 %v482_v47, %v468_v43  ;;  %v470_v51 = vmul.f32 %v452_v48, %v1558_v52 }
 0x12e   : > { %587 = vrot.lane.b32.xlu1 %v1521_v37, %s1188_s7  ;;  %721 = vrot.lane.b32.xlu0 %v1524_v38, %s1190_s0 }
 0x12f   : > { %v484_v53 = vadd.f32 %v483_v50, %v469_v29 }
 0x130   : > { %v456_v54 = vpop.permute.xlu1 %455  ;;  %v454_v13 = vpop.permute.xlu0 %453 }
 0x131   : > { %v471_v56 = vmul.f32 %v454_v13, %v1563_v55  ;;  %v485_v2 = vadd.f32 %v484_v53, %v470_v51  ;;  %v472_v57 = vmul.f32 %v456_v54, %v1570_v58 }
 0x132   : > { %723 = vrot.lane.b32.xlu1 %v1521_v37, %s1190_s0  ;;  %655 = vrot.lane.b32.xlu0 %v1521_v37, %s1189_s4 }
 0x133   : > { %v486_v59 = vadd.f32 %v485_v2, %v471_v56 }
 0x134   : > { %v496_v60 = vpop.permute.xlu1 %495  ;;  %v494_v38 = vpop.permute.xlu0 %493 }
 0x135   : > { %v487_v61 = vadd.f32 %v486_v59, %v472_v57  ;;  %v526_v62 = vmul.f32 %v496_v60, %v1447_v9  ;;  %v525_v63 = vmul.f32 %v494_v38, %v1439_v6 }
 0x136   : > { %657 = vrot.lane.b32.xlu1 %v1544_v46, %s1189_s4  ;;  %589 = vrot.lane.b32.xlu0 %v1544_v46, %s1188_s7 }
 0x137   : > { %v488_v37 = vmul.f32 0.0625, %v487_v61  ;;  %v541_v15 = vadd.f32 %v526_v62, %v525_v63 }
 0x138   : > { %v500_v8 = vpop.permute.xlu1 %499  ;;  %v498_v10 = vpop.permute.xlu0 %497 }
 0x139   : > { %v490_v11 = vsel %vm489_vm2, %v488_v37, 0.0  ;;  %v527_v16 = vmul.f32 %v498_v10, %v1442_v7  ;;  %v528_v22 = vmul.f32 %v500_v8, %v1458_v12 }
 0x13a   : > { %909 = vst [vmem:[%s1579_s18 + $0x18] sm:$0xff] %v490_v11  ;;  %591 = vrot.lane.b32.xlu1 %v1541_v45, %s1188_s7  ;;  %725 = vrot.lane.b32.xlu0 %v1544_v46, %s1190_s0 }
 0x13b   : > { %v542_v3 = vadd.f32 %v541_v15, %v527_v16 }
 0x13c   : > { %v504_v18 = vpop.permute.xlu1 %503  ;;  %v502_v5 = vpop.permute.xlu0 %501 }
 0x13d   : > { %v529_v19 = vmul.f32 %v502_v5, %v1469_v17  ;;  %v543_v1 = vadd.f32 %v542_v3, %v528_v22  ;;  %v530_v21 = vmul.f32 %v504_v18, %v1478_v20 }
 0x13e   : > { %727 = vrot.lane.b32.xlu1 %v1541_v45, %s1190_s0  ;;  %659 = vrot.lane.b32.xlu0 %v1541_v45, %s1189_s4 }
 0x13f   : > { %v544_v23 = vadd.f32 %v543_v1, %v529_v19 }
 0x140   : > { %v508_v24 = vpop.permute.xlu1 %507  ;;  %v506_v26 = vpop.permute.xlu0 %505 }
 0x141   : > { %v531_v46 = vmul.f32 %v506_v26, %v1489_v25  ;;  %v545_v4 = vadd.f32 %v544_v23, %v530_v21  ;;  %v532_v27 = vmul.f32 %v508_v24, %v1498_v28 }
 0x143   : > { %v546_v32 = vadd.f32 %v545_v4, %v531_v46 }
 0x144   : > { %v512_v34 = vpop.permute.xlu1 %511  ;;  %v510_v35 = vpop.permute.xlu0 %509 }
 0x145   : > { %v533_v39 = vmul.f32 %v510_v35, %v1509_v33  ;;  %v547_v40 = vadd.f32 %v546_v32, %v532_v27  ;;  %v534_v42 = vmul.f32 %v512_v34, %v1518_v36 }
 0x147   : > { %v548_v30 = vadd.f32 %v547_v40, %v533_v39 }
 0x148   : > { %v516_v45 = vpop.permute.xlu1 %515  ;;  %v514_v0 = vpop.permute.xlu0 %513 }
 0x149   : > { %v535_v43 = vmul.f32 %v514_v0, %v1529_v41  ;;  %v549_v47 = vadd.f32 %v548_v30, %v534_v42  ;;  %v536_v48 = vmul.f32 %v516_v45, %v1538_v44 }
 0x14b   : > { %v550_v14 = vadd.f32 %v549_v47, %v535_v43 }
 0x14c   : > { %v520_v29 = vpop.permute.xlu1 %519  ;;  %v518_v50 = vpop.permute.xlu0 %517 }
 0x14d   : > { %v537_v51 = vmul.f32 %v518_v50, %v1549_v49  ;;  %v551_v53 = vadd.f32 %v550_v14, %v536_v48  ;;  %v538_v54 = vmul.f32 %v520_v29, %v1558_v52 }
 0x14f   : > { %v552_v13 = vadd.f32 %v551_v53, %v537_v51 }
 0x150   : > { %v524_v56 = vpop.permute.xlu1 %523  ;;  %v522_v2 = vpop.permute.xlu0 %521 }
 0x151   : > { %v539_v57 = vmul.f32 %v522_v2, %v1563_v55  ;;  %v553_v59 = vadd.f32 %v552_v13, %v538_v54  ;;  %v540_v60 = vmul.f32 %v524_v56, %v1570_v58 }
 0x153   : > { %v554_v38 = vadd.f32 %v553_v59, %v539_v57 }
 0x154   : > { %v564_v61 = vpop.permute.xlu1 %563  ;;  %v562_v62 = vpop.permute.xlu0 %561 }
 0x155   : > { %v555_v63 = vadd.f32 %v554_v38, %v540_v60  ;;  %v594_v48 = vmul.f32 %v564_v61, %v1447_v9  ;;  %v593_v14 = vmul.f32 %v562_v62, %v1439_v6 }
 0x157   : > { %v556_v37 = vmul.f32 0.0625, %v555_v63  ;;  %v609_v13 = vadd.f32 %v594_v48, %v593_v14 }
 0x158   : > { %v632_v8 = vpop.permute.xlu1 %631  ;;  %v630_v10 = vpop.permute.xlu0 %629 }
 0x159   : > { %v558_v11 = vsel %vm557_vm3, %v556_v37, 0.0  ;;  %v662_v53 = vmul.f32 %v632_v8, %v1447_v9  ;;  %v661_v54 = vmul.f32 %v630_v10, %v1439_v6 }
 0x15a   : > { %910 = vst [vmem:[%s1579_s18 + $0x20] sm:$0xff] %v558_v11 }
 0x15b   : > { %v677_v37 = vadd.f32 %v662_v53, %v661_v54 }
 0x15c   : > { %v700_v15 = vpop.permute.xlu1 %699  ;;  %v698_v16 = vpop.permute.xlu0 %697 }
 0x15d   : > { %v730_v56 = vmul.f32 %v700_v15, %v1447_v9  ;;  %v729_v2 = vmul.f32 %v698_v16, %v1439_v6 }
 0x15f   : > { %v745_v10 = vadd.f32 %v730_v56, %v729_v2 }
 0x160   : > { %v634_v22 = vpop.permute.xlu1 %633  ;;  %v566_v3 = vpop.permute.xlu0 %565 }
 0x161   : > { %v595_v51 = vmul.f32 %v566_v3, %v1442_v7  ;;  %v663_v59 = vmul.f32 %v634_v22, %v1442_v7 }
 0x163   : > { %v610_v61 = vadd.f32 %v609_v13, %v595_v51  ;;  %v678_v15 = vadd.f32 %v677_v37, %v663_v59 }
 0x164   : > { %v568_v18 = vpop.permute.xlu1 %567  ;;  %v702_v5 = vpop.permute.xlu0 %701 }
 0x165   : > { %v596_v57 = vmul.f32 %v568_v18, %v1458_v12  ;;  %v731_v62 = vmul.f32 %v702_v5, %v1442_v7 }
 0x167   : > { %v611_v11 = vadd.f32 %v610_v61, %v596_v57  ;;  %v746_v18 = vadd.f32 %v745_v10, %v731_v62 }
 0x168   : > { %v704_v19 = vpop.permute.xlu1 %703  ;;  %v636_v1 = vpop.permute.xlu0 %635 }
 0x169   : > { %v664_v8 = vmul.f32 %v636_v1, %v1458_v12  ;;  %v732_v9 = vmul.f32 %v704_v19, %v1458_v12 }
 0x16b   : > { %v747_v14 = vadd.f32 %v746_v18, %v732_v9 }
 0x16c   : > { %v638_v21 = vpop.permute.xlu1 %637  ;;  %v570_v23 = vpop.permute.xlu0 %569 }
 0x16d   : > { %v597_v63 = vmul.f32 %v570_v23, %v1469_v17  ;;  %v665_v16 = vmul.f32 %v638_v21, %v1469_v17  ;;  %v679_v23 = vadd.f32 %v678_v15, %v664_v8 }
 0x16f   : > { %v612_v48 = vadd.f32 %v611_v11, %v597_v63 }
 0x170   : > { %v572_v24 = vpop.permute.xlu1 %571  ;;  %v706_v26 = vpop.permute.xlu0 %705 }
 0x171   : > { %v598_v6 = vmul.f32 %v572_v24, %v1478_v20  ;;  %v733_v7 = vmul.f32 %v706_v26, %v1469_v17  ;;  %v680_v24 = vadd.f32 %v679_v23, %v665_v16 }
 0x173   : > { %v613_v51 = vadd.f32 %v612_v48, %v598_v6  ;;  %v748_v13 = vadd.f32 %v747_v14, %v733_v7 }
 0x174   : > { %v708_v46 = vpop.permute.xlu1 %707  ;;  %v640_v4 = vpop.permute.xlu0 %639 }
 0x175   : > { %v666_v1 = vmul.f32 %v640_v4, %v1478_v20  ;;  %v734_v12 = vmul.f32 %v708_v46, %v1478_v20 }
 0x177   : > { %v749_v2 = vadd.f32 %v748_v13, %v734_v12 }
 0x178   : > { %v642_v27 = vpop.permute.xlu1 %641  ;;  %v574_v32 = vpop.permute.xlu0 %573 }
 0x179   : > { %v599_v5 = vmul.f32 %v574_v32, %v1489_v25  ;;  %v667_v21 = vmul.f32 %v642_v27, %v1489_v25  ;;  %v681_v32 = vadd.f32 %v680_v24, %v666_v1 }
 0x17b   : > { %v614_v56 = vadd.f32 %v613_v51, %v599_v5 }
 0x17c   : > { %v576_v34 = vpop.permute.xlu1 %575  ;;  %v710_v35 = vpop.permute.xlu0 %709 }
 0x17d   : > { %v600_v19 = vmul.f32 %v576_v34, %v1498_v28  ;;  %v735_v17 = vmul.f32 %v710_v35, %v1489_v25  ;;  %v682_v34 = vadd.f32 %v681_v32, %v667_v21 }
 0x17f   : > { %v615_v57 = vadd.f32 %v614_v56, %v600_v19  ;;  %v750_v62 = vadd.f32 %v749_v2, %v735_v17 }
 0x180   : > { %v712_v39 = vpop.permute.xlu1 %711  ;;  %v644_v40 = vpop.permute.xlu0 %643 }
 0x181   : > { %v668_v4 = vmul.f32 %v644_v40, %v1498_v28  ;;  %v736_v20 = vmul.f32 %v712_v39, %v1498_v28 }
 0x183   : > { %v751_v37 = vadd.f32 %v750_v62, %v736_v20 }
 0x184   : > { %v646_v42 = vpop.permute.xlu1 %645  ;;  %v578_v30 = vpop.permute.xlu0 %577 }
 0x185   : > { %v601_v26 = vmul.f32 %v578_v30, %v1509_v33  ;;  %v669_v27 = vmul.f32 %v646_v42, %v1509_v33  ;;  %v683_v30 = vadd.f32 %v682_v34, %v668_v4 }
 0x187   : > { %v616_v63 = vadd.f32 %v615_v57, %v601_v26 }
 0x188   : > { %v580_v45 = vpop.permute.xlu1 %579  ;;  %v714_v0 = vpop.permute.xlu0 %713 }
 0x189   : > { %v602_v46 = vmul.f32 %v580_v45, %v1518_v36  ;;  %v737_v25 = vmul.f32 %v714_v0, %v1509_v33  ;;  %v684_v45 = vadd.f32 %v683_v30, %v669_v27 }
 0x18b   : > { %v617_v8 = vadd.f32 %v616_v63, %v602_v46  ;;  %v752_v9 = vadd.f32 %v751_v37, %v737_v25 }
 0x18c   : > { %v1794_v43 = vpop.permute.xlu1 %715  ;;  %v648_v47 = vpop.permute.xlu0 %647 }
 0x18d   : > { %v670_v40 = vmul.f32 %v648_v47, %v1518_v36  ;;  %v738_v28 = vmul.f32 %v1794_v43, %v1518_v36 }
 0x18f   : > { %v685_v47 = vadd.f32 %v684_v45, %v670_v40  ;;  %v753_v15 = vadd.f32 %v752_v9, %v738_v28 }
 0x190   : > { %v1798_v29 = vpop.permute.xlu1 %649  ;;  %v582_v50 = vpop.permute.xlu0 %581 }
 0x191   : > { %v603_v35 = vmul.f32 %v582_v50, %v1529_v41  ;;  %v671_v42 = vmul.f32 %v1798_v29, %v1529_v41 }
 0x193   : > { %v618_v33 = vadd.f32 %v617_v8, %v603_v35 }
 0x194   : > { %v584_v60 = vpop.permute.xlu1 %583  ;;  %v718_v38 = vpop.permute.xlu0 %717 }
 0x195   : > { %v604_v39 = vmul.f32 %v584_v60, %v1538_v44  ;;  %v739_v0 = vmul.f32 %v718_v38, %v1529_v41  ;;  %v686_v60 = vadd.f32 %v685_v47, %v671_v42 }
 0x197   : > { %v619_v16 = vadd.f32 %v618_v33, %v604_v39  ;;  %v754_v7 = vadd.f32 %v753_v15, %v739_v0 }
 0x198   : > { %v720_v22 = vpop.permute.xlu1 %719  ;;  %v652_v3 = vpop.permute.xlu0 %651 }
 0x199   : > { %v672_v6 = vmul.f32 %v652_v3, %v1538_v44  ;;  %v740_v36 = vmul.f32 %v720_v22, %v1538_v44 }
 0x19b   : > { %v687_v23 = vadd.f32 %v686_v60, %v672_v6  ;;  %v755_v1 = vadd.f32 %v754_v7, %v740_v36 }
 0x19c   : > { %v654_v53 = vpop.permute.xlu1 %653  ;;  %v586_v54 = vpop.permute.xlu0 %585 }
 0x19d   : > { %v605_v50 = vmul.f32 %v586_v54, %v1549_v49  ;;  %v673_v29 = vmul.f32 %v654_v53, %v1549_v49 }
 0x19f   : > { %v620_v5 = vadd.f32 %v619_v16, %v605_v50  ;;  %v688_v14 = vadd.f32 %v687_v23, %v673_v29 }
 0x1a0   : > { %v588_v59 = vpop.permute.xlu1 %587  ;;  %v722_v61 = vpop.permute.xlu0 %721 }
 0x1a1   : > { %v606_v43 = vmul.f32 %v588_v59, %v1558_v52  ;;  %v741_v41 = vmul.f32 %v722_v61, %v1549_v49 }
 0x1a3   : > { %v621_v44 = vadd.f32 %v620_v5, %v606_v43  ;;  %v756_v24 = vadd.f32 %v755_v1, %v741_v41 }
 0x1a4   : > { %v724_v10 = vpop.permute.xlu1 %723  ;;  %v656_v11 = vpop.permute.xlu0 %655 }
 0x1a5   : > { %v674_v3 = vmul.f32 %v656_v11, %v1558_v52  ;;  %v742_v22 = vmul.f32 %v724_v10, %v1558_v52 }
 0x1a7   : > { %v689_v54 = vadd.f32 %v688_v14, %v674_v3  ;;  %v757_v13 = vadd.f32 %v756_v24, %v742_v22 }
 0x1a8   : > { %v658_v18 = vpop.permute.xlu1 %657  ;;  %v590_v48 = vpop.permute.xlu0 %589 }
 0x1a9   : > { %v607_v38 = vmul.f32 %v590_v48, %v1563_v55  ;;  %v675_v51 = vmul.f32 %v658_v18, %v1563_v55 }
 0x1ab   : > { %v622_v21 = vadd.f32 %v621_v44, %v607_v38  ;;  %v690_v17 = vadd.f32 %v689_v54, %v675_v51 }
 0x1ac   : > { %v592_v12 = vpop.permute.xlu1 %591  ;;  %v726_v19 = vpop.permute.xlu0 %725 }
 0x1ad   : > { %v608_v49 = vmul.f32 %v592_v12, %v1570_v58  ;;  %v743_v53 = vmul.f32 %v726_v19, %v1563_v55 }
 0x1af   : > { %v623_v56 = vadd.f32 %v622_v21, %v608_v49  ;;  %v758_v4 = vadd.f32 %v757_v13, %v743_v53 }
 0x1b0   : > { %v728_v52 = vpop.permute.xlu1 %727  ;;  %v660_v26 = vpop.permute.xlu0 %659 }
 0x1b1   : > { %v624_v32 = vmul.f32 0.0625, %v623_v56  ;;  %v744_v2 = vmul.f32 %v728_v52, %v1570_v58  ;;  %v676_v57 = vmul.f32 %v660_v26, %v1570_v58 }
 0x1b3   : > { %v626_v55 = vsel %vm625_vm4, %v624_v32, 0.0  ;;  %v759_v20 = vadd.f32 %v758_v4, %v744_v2  ;;  %v691_v46 = vadd.f32 %v690_v17, %v676_v57 }
 0x1b4   : > { %911 = vst [vmem:[%s1579_s18 + $0x28] sm:$0xff] %v626_v55 }
 0x1b5   : > { %v760_v34 = vmul.f32 0.0625, %v759_v20  ;;  %v692_v27 = vmul.f32 0.0625, %v691_v46 }
 0x1b7   : > { %v762_v58 = vsel %vm761_vm5, %v760_v34, 0.0  ;;  %v694_v59 = vsel %vm693_vm6, %v692_v27, 0.0 }
 0x1b8   : > { %913 = vst [vmem:[%s1579_s18 + $0x38] sm:$0xff] %v762_v58  ;;  %912 = vst [vmem:[%s1579_s18 + $0x30] sm:$0xff] %v694_v59 }
 0x1b9   : > { %1088 = shalt.err (!%p1085_p12)
}
 0x1ba   : > { %s1089_s6 = scalar_lea.hbm %s1860_s23, 1024  ;;  %s1093_s17 = scalar_lea.hbm %s1918_s2, 4096 }
 0x1bb   : > { %p1090_p10 = scmp.ne.s32.totalorder %s1860_s23, %s1089_s6  ;;  %p1094_p4 = scmp.lt.u32.totalorder %s1860_s23, %s1918_s2 }
 0x1bc   : > { %p1095_p3 = scmp.lt.u32.totalorder %s1093_s17, %s1089_s6  ;;  %p1097_p0 = scmp.lt.u32.totalorder %s1089_s6, %s1860_s23 }
 0x1bd   : > { %p1091_p11 = pnand %p1090_p10, %p1936_p2 }
 0x1be   : > { %p1096_p8 = por %p1095_p3, %p1094_p4 }
 0x1bf   : > { %p1092_p1 = pneg %p1091_p11 }
 0x1c0   : > { %p1098_p5 = por %p1097_p0, %p1096_p8 }
 0x1c2   : > { %p1099_p13 = pnand %p1098_p5, %p1092_p1 }
 0x1c4   : > { %1102 = shalt.err (!%p1099_p13)
}
 0x1c5   : > { %s1192_s0 = smov 128   ;;  %s1193_s20 = smov 256  }
 0x1c6   : > { %s1194_s5 = smov 8  }
 0x1c7   : > { %923 = dma.vmem_to_hbm [thread:$0]  (%p1936_p2), %s1852_s26, 1024, %s1860_s23, %s766_s21, %s1192_s0, %s1193_s20, %s1194_s5  }
 0x1c8 PF: > { %p937_p6 = scmp.ge.s32.totalorder %s1177_s16, 2  ;;  %s795_s13 = sand.u32 1, %s1149_s9  }
 0x1c9   : > { %p1937_p7 = scmp.ne.s32.totalorder %s1930_s28, 0  ;;  %s796_s12 = scalar_lea.sflag [#allocation4], %s795_s13 }
 0x1cb   : > { %p933_p9 = pnand %p937_p6, %p1937_p7 }
 0x1cd   : > { %1144 = dma.done.wait (!%p933_p9), %s796_s12, 1024  }
 0x1ce   : > { %1146 = vsyncadd (!%p933_p9), %s796_s12, 4294966272  ;;  %s21_s16 = sadd.s32 1, %s1177_s16   ;;  %s1938_s25 = sld [smem:[#allocation11_spill]] }
 0x1cf   : > { %p18_p12 = scmp.ge.s32.totalorder %s21_s16, 6   ;;  %s1939_s22 = sld [smem:[#allocation12_spill]] }
 0x1d0   : > { %s1940_s9 = smov %s1153_s10  ;;  %s1941_s10 = smov %s1157_s11 }
 0x1d1   : > { %s1942_s11 = smov %s1290_s30  ;;  %s1943_s12 = smov %s1169_s14 }
 0x1d2   : > { %s1944_s13 = smov %s1173_s15  ;;  %20 = sbr.rel (!%p18_p12) target bundleno = 11 (0xb), region = 93 }
 0x1d4   : > { %s1945_s14 = smov %s1938_s25 }
 0x1d5   : > { %s1946_s15 = smov %s1939_s22 }
 0x1d9   :  { %801 = vsyncpa [#allocation3], 1 }
 0x1da   :  { %803 = vsyncpa [#allocation3 + $0x1], 1 }
 0x1db   :  { %804 = vsyncpa [#allocation6], 1 }
 0x1dc   :  { %806 = vsyncpa [#allocation6 + $0x1], 1 }
 0x1dd   :  { %807 = vsyncpa [#allocation4], 1 }
 0x1de   :  { %809 = vsyncpa [#allocation4 + $0x1], 1 }

</bundles_post_ra>
